<compile_context>
chip_gen: v5e
topology: v5e:2x2
jax: 0.10.0
libtpu: 0.0.40
codegen_flags: <defaults>
</compile_context>

<pallas_src>
import functools

import jax
import jax.numpy as jnp
from jax import lax
from jax.experimental import pallas as pl
from jax.experimental.pallas import tpu as pltpu


# --------------------------------------------------------------------------- #
# Helpers
# --------------------------------------------------------------------------- #
def _round_up(x, m):
    return ((x + m - 1) // m) * m


def _pad_rows(a, n):
    if a.shape[0] == n:
        return a
    widths = [(0, n - a.shape[0])] + [(0, 0)] * (a.ndim - 1)
    return jnp.pad(a, widths)            # zero pad; padded rows sliced off


def _pick_tile(batch, block_rows):
    """Batch tile: single full block when it fits, else a multiple of 128
    targeting >= 4 blocks so both v7x TensorCores get work."""
    b8 = _round_up(max(batch, 8), 8)
    if b8 <= block_rows:
        return b8                        # one block == full array (always legal)
    target = _round_up(pl.cdiv(b8, 4), 128)
    return max(128, min(target, _round_up(block_rows, 128)))


def _auto_gather(n_users, n_items, n_factors, tm):
    onehot_tmp_bytes = (n_users + n_items) * tm * 4            # one-hot temps
    table_vmem_bytes = 2 * (n_users + n_items) * n_factors * 4  # 2x buffered
    if onehot_tmp_bytes <= (8 << 20) and table_vmem_bytes <= (8 << 20):
        return "onehot"
    return "dma"


def _vmem_limit_bytes(tm, d, n_users, n_items, n_factors, gather):
    f32 = 4
    weights = (128 * d + 128 + 64 * 128 + 64 + 64) * f32
    if gather == "onehot":
        streamed = 2 * (tm * d * f32 + 2 * tm * 4 + tm * f32)   # x, idx, out
        resident = 2 * (weights + (n_users + n_items) * n_factors * f32)
        temps = (n_users + n_items) * tm * f32                  # one-hot temps
    else:
        streamed = 2 * (tm * d * f32 + tm * f32)                # x, out
        resident = 2 * weights
        temps = 2 * tm * n_factors * f32                        # gather scratch
    budget = streamed + resident + temps + (8 << 20)            # + headroom
    return int(min(max(budget, 16 << 20), 48 << 20))            # v7x-safe cap


# --------------------------------------------------------------------------- #
# Kernels
# --------------------------------------------------------------------------- #
def _make_onehot_kernel(compute_dtype):
    """Small-table path: whole factor tables VMEM resident, gather fused as an
    exact one-hot matmul. Everything computed transposed -> lane-dense (1,tm)
    output row (unmasked stores)."""

    def kernel(x_ref, uidx_ref, iidx_ref, uft_ref, ift_ref,
               w1t_ref, b1c_ref, w2t_ref, b2c_ref, w4c_ref, bias_ref, out_ref):
        cd = compute_dtype
        tm = x_ref.shape[0]

        # ---- Content MLP (transposed): h1^T = W1^T @ x^T  -> (128, tm) ----
        h1t = lax.dot_general(
            w1t_ref[...].astype(cd), x_ref[...].astype(cd),
            dimension_numbers=(((1,), (1,)), ((), ())),
            preferred_element_type=jnp.float32)
        h1t = jnp.maximum(h1t + b1c_ref[...], 0.0)
        h2t = jnp.dot(w2t_ref[...].astype(cd), h1t.astype(cd),
                      preferred_element_type=jnp.float32)
        h2t = jnp.maximum(h2t + b2c_ref[...], 0.0)                    # (64, tm)
        # fc4 (pre-scaled by w_fc[0]): elementwise mul + sublane reduce,
        # intentionally not an N=1 MXU matmul.
        content = jnp.sum(h2t * w4c_ref[...], axis=0, keepdims=True)  # (1, tm)

        # ---- CF gather fused as exact one-hot matmuls (tables are small).
        # NOTE: out-of-range indices give an all-zero one-hot row -> cf = 0
        # (the DMA path clamps instead, like nn.Embedding bound checks).
        n_users = uft_ref.shape[1]
        n_items = ift_ref.shape[1]
        u_oh = (lax.broadcasted_iota(jnp.int32, (n_users, tm), 0)
                == uidx_ref[...]).astype(jnp.float32)                 # (U, tm)
        i_oh = (lax.broadcasted_iota(jnp.int32, (n_items, tm), 0)
                == iidx_ref[...]).astype(jnp.float32)                 # (I, tm)
        uet = jnp.dot(uft_ref[...], u_oh, preferred_element_type=jnp.float32)
        iet = jnp.dot(ift_ref[...], i_oh, preferred_element_type=jnp.float32)
        cf = jnp.sum(uet * iet, axis=0, keepdims=True)                # (1, tm)

        # item_factors already carry w_fc[1]; bias = b4*w_fc[0] + b_fc.
        out_ref[...] = content + cf + bias_ref[0]

    return kernel


def _make_dma_kernel(compute_dtype):
    """Large-table path: indices in SMEM, factor tables stay in HBM (pl.ANY),
    rows gathered with per-row DMAs into VMEM scratch."""

    def kernel(uidx_ref, iidx_ref, x_ref, uf_hbm, if_hbm,
               w1_ref, b1_ref, w2_ref, b2_ref, w4s_ref, bias_ref,
               out_ref, ue_buf, ie_buf, sem):
        cd = compute_dtype
        tm = x_ref.shape[0]
        n_users = uf_hbm.shape[0]
        n_items = if_hbm.shape[0]
        base = pl.program_id(0) * tm

        # TODO(synk): double-buffer / batch these row DMAs so the gather
        # overlaps the MLP compute instead of running serially.
        @pl.loop(0, tm)
        def _(r):
            u = jnp.clip(uidx_ref[base + r], 0, n_users - 1)
            it = jnp.clip(iidx_ref[base + r], 0, n_items - 1)
            cu = pltpu.make_async_copy(uf_hbm.at[u], ue_buf.at[r], sem.at[0])
            ci = pltpu.make_async_copy(if_hbm.at[it], ie_buf.at[r], sem.at[1])
            cu.start()
            ci.start()
            cu.wait()
            ci.wait()

        x = x_ref[...].astype(cd)
        h1 = jnp.dot(x, w1_ref[...].astype(cd),
                     preferred_element_type=jnp.float32) + b1_ref[...]
        h1 = jnp.maximum(h1, 0.0)
        h2 = jnp.dot(h1.astype(cd), w2_ref[...].astype(cd),
                     preferred_element_type=jnp.float32) + b2_ref[...]
        h2 = jnp.maximum(h2, 0.0)
        content = jnp.sum(h2 * w4s_ref[...], axis=1, keepdims=True)   # (tm, 1)
        cf = jnp.sum(ue_buf[...] * ie_buf[...], axis=1, keepdims=True)
        out_ref[...] = content + cf + bias_ref[0]

    return kernel


# --------------------------------------------------------------------------- #
# Wrapper
# --------------------------------------------------------------------------- #
def hybrid_forward(content_input, user, item, params, *, block_rows=2048,
                   compute_dtype=jnp.bfloat16, gather="auto"):
    B, D = content_input.shape
    n_users, n_factors = params["user_factors"].shape
    n_items = params["item_factors"].shape[0]

    tm = _pick_tile(B, block_rows)
    B_pad = _round_up(B, tm)
    grid = (B_pad // tm,)

    if gather == "auto":
        gather = _auto_gather(n_users, n_items, n_factors, tm)

    x = _pad_rows(content_input, B_pad)
    uidx = _pad_rows(user.astype(jnp.int32).reshape(B), B_pad)
    iidx = _pad_rows(item.astype(jnp.int32).reshape(B), B_pad)

    rep = lambda shape: pl.BlockSpec(shape, lambda i: (0, 0))   # replicated
    smem = pl.BlockSpec(memory_space=pltpu.MemorySpace.SMEM)
    vmem_limit = _vmem_limit_bytes(tm, D, n_users, n_items, n_factors, gather)

    if gather == "onehot":
        out = pl.pallas_call(
            _make_onehot_kernel(compute_dtype),
            out_shape=jax.ShapeDtypeStruct((1, B_pad), jnp.float32),
            grid_spec=pltpu.PrefetchScalarGridSpec(
                num_scalar_prefetch=0,
                grid=grid,
                in_specs=[
                    pl.BlockSpec((tm, D), lambda i: (i, 0)),   # content_input
                    pl.BlockSpec((1, tm), lambda i: (0, i)),   # user idx (lane-dense)
                    pl.BlockSpec((1, tm), lambda i: (0, i)),   # item idx (lane-dense)
                    rep((n_factors, n_users)),                 # user_factors^T
                    rep((n_factors, n_items)),                 # (item_factors*w_fc1)^T
                    rep((128, D)),                             # W1^T
                    rep((128, 1)),                             # b1 (column)
                    rep((64, 128)),                            # W2^T
                    rep((64, 1)),                              # b2 (column)
                    rep((64, 1)),                              # fc4.w * w_fc0 (column)
                    smem,                                      # fused bias scalar
                ],
                out_specs=pl.BlockSpec((1, tm), lambda i: (0, i)),
            ),
            compiler_params=pltpu.CompilerParams(
                dimension_semantics=("parallel",),             # megacore batch split
                vmem_limit_bytes=vmem_limit,
            ),
        )(x, uidx.reshape(1, B_pad), iidx.reshape(1, B_pad),
          params["uf_t"], params["ift_scaled_t"],
          params["w1_t"], params["b1_col"], params["w2_t"], params["b2_col"],
          params["w4_col_scaled"], params["bias"])
        return out[0, :B].reshape(B, 1)

    # ---- large-table path: SMEM indices + per-row DMA gather from HBM ----
    out = pl.pallas_call(
        _make_dma_kernel(compute_dtype),
        out_shape=jax.ShapeDtypeStruct((B_pad, 1), jnp.float32),
        grid_spec=pltpu.PrefetchScalarGridSpec(
            num_scalar_prefetch=0,
            grid=grid,
            in_specs=[
                smem,                                          # user idx (SMEM)
                smem,                                          # item idx (SMEM)
                pl.BlockSpec((tm, D), lambda i: (i, 0)),       # content_input
                pl.BlockSpec(memory_space=pl.ANY),             # user_factors (HBM)
                pl.BlockSpec(memory_space=pl.ANY),             # item_factors*w_fc1 (HBM)
                rep((D, 128)),                                 # W1
                rep((1, 128)),                                 # b1
                rep((128, 64)),                                # W2
                rep((1, 64)),                                  # b2
                rep((1, 64)),                                  # fc4.w * w_fc0
                smem,                                          # fused bias scalar
            ],
            out_specs=pl.BlockSpec((tm, 1), lambda i: (i, 0)),
            scratch_shapes=[
                pltpu.VMEM((tm, n_factors), jnp.float32),
                pltpu.VMEM((tm, n_factors), jnp.float32),
                pltpu.SemaphoreType.DMA((2,)),
            ],
        ),
        compiler_params=pltpu.CompilerParams(
            dimension_semantics=("arbitrary",),
            vmem_limit_bytes=vmem_limit,
        ),
    )(uidx, iidx, x, params["user_factors"], params["item_factors_scaled"],
      params["w1"], params["b1_row"], params["w2"], params["b2_row"],
      params["w4_row_scaled"], params["bias"])
    return out[:B]


# --------------------------------------------------------------------------- #
# Parameters / reference
# --------------------------------------------------------------------------- #
def init_params(key, content_input_dim, num_users, num_items, num_factors):
    ks = jax.random.split(key, 10)
    u = lambda k, shape, bound: jax.random.uniform(
        k, shape, jnp.float32, -bound, bound)
    d = content_input_dim
    p = {
        # ContentModel
        "w1": u(ks[0], (d, 128), 1.0 / d ** 0.5),
        "b1_row": u(ks[1], (1, 128), 1.0 / d ** 0.5),
        "w2": u(ks[2], (128, 64), 1.0 / 128 ** 0.5),
        "b2_row": u(ks[3], (1, 64), 1.0 / 128 ** 0.5),
        "w4_row": u(ks[4], (1, 64), 1.0 / 64 ** 0.5),
        "b4": u(ks[5], (), 1.0 / 64 ** 0.5),
        # CollaborativeFilteringModel embeddings
        "user_factors": jax.random.normal(ks[6], (num_users, num_factors),
                                          jnp.float32),
        "item_factors": jax.random.normal(ks[7], (num_items, num_factors),
                                          jnp.float32),
        # Final fc: Linear(2, 1)
        "w_fc": u(ks[8], (2,), 1.0 / 2 ** 0.5),
        "b_fc": u(ks[9], (), 1.0 / 2 ** 0.5),
    }
    # Derived constants computed ONCE at init (no per-call host->device glue).
    p["w4_row_scaled"] = p["w4_row"] * p["w_fc"][0]             # (1, 64)
    p["w4_col_scaled"] = p["w4_row_scaled"].T                   # (64, 1)
    p["w1_t"] = p["w1"].T                                       # (128, D)
    p["b1_col"] = p["b1_row"].T                                 # (128, 1)
    p["w2_t"] = p["w2"].T                                       # (64, 128)
    p["b2_col"] = p["b2_row"].T                                 # (64, 1)
    p["uf_t"] = p["user_factors"].T                             # (F, U)
    p["item_factors_scaled"] = p["item_factors"] * p["w_fc"][1]  # (I, F)
    p["ift_scaled_t"] = p["item_factors_scaled"].T              # (F, I)
    p["bias"] = (p["b4"] * p["w_fc"][0] + p["b_fc"]).reshape(1).astype(
        jnp.float32)                                            # fused bias
    return p


def reference_forward(content_input, user, item, p):
    h1 = jnp.maximum(content_input @ p["w1"] + p["b1_row"], 0.0)
    h2 = jnp.maximum(h1 @ p["w2"] + p["b2_row"], 0.0)
    content = jnp.sum(h2 * p["w4_row"], axis=1, keepdims=True) + p["b4"]
    ue = p["user_factors"][user]
    ie = p["item_factors"][item]
    cf = jnp.sum(ue * ie, axis=1, keepdims=True)
    combined = jnp.concatenate([content, cf], axis=1)
    return combined @ p["w_fc"].reshape(2, 1) + p["b_fc"]


# --------------------------------------------------------------------------- #
# Demo / self-check
# --------------------------------------------------------------------------- #
if __name__ == "__main__":
    B = 8
    CONTENT_DIM = 32
    NUM_USERS = 10
    NUM_ITEMS = 20
    NUM_FACTORS = 16

    key = jax.random.PRNGKey(0)
    k_params, k_x, k_u, k_i = jax.random.split(key, 4)

    params = init_params(k_params, CONTENT_DIM, NUM_USERS, NUM_ITEMS,
                         NUM_FACTORS)
    content_input = jax.random.normal(k_x, (B, CONTENT_DIM), jnp.float32)
    user = jax.random.randint(k_u, (B,), 0, NUM_USERS, jnp.int32)
    item = jax.random.randint(k_i, (B,), 0, NUM_ITEMS, jnp.int32)

    ref = reference_forward(content_input, user, item, params)

    # 1) default: one-hot gather path, bf16 matmuls (f32 accumulation).
    out_bf16 = jax.block_until_ready(
        hybrid_forward(content_input, user, item, params))
    assert out_bf16.shape == (B, 1)
    assert jnp.allclose(out_bf16, ref, atol=2e-2, rtol=2e-2), (
        f"bf16 path: max abs err {jnp.max(jnp.abs(out_bf16 - ref))}")

    # 2) one-hot gather path, full f32 compute -> exact vs reference.
    out_f32 = jax.block_until_ready(
        hybrid_forward(content_input, user, item, params,
                       compute_dtype=jnp.float32))
    assert out_f32.shape == (B, 1)
    assert jnp.allclose(out_f32, ref, atol=1e-5, rtol=1e-5), (
        f"f32 one-hot path: max abs err {jnp.max(jnp.abs(out_f32 - ref))}")

    # 3) forced large-table path (SMEM indices + per-row DMA gather), f32.
    out_dma = jax.block_until_ready(
        hybrid_forward(content_input, user, item, params,
                       gather="dma", compute_dtype=jnp.float32))
    assert out_dma.shape == (B, 1)
    assert jnp.allclose(out_dma, ref, atol=1e-5, rtol=1e-5), (
        f"f32 DMA path: max abs err {jnp.max(jnp.abs(out_dma - ref))}")

    print("KERNEL_OK")
</pallas_src>

<mosaic_0001>
module attributes {stable_mosaic.version = 11 : i64} {
  func.func @kernel(%arg0: i32, %arg1: memref<8x32xf32, #tpu.memory_space<vmem>>, %arg2: memref<1x8xi32, #tpu.memory_space<vmem>>, %arg3: memref<1x8xi32, #tpu.memory_space<vmem>>, %arg4: memref<16x10xf32, #tpu.memory_space<vmem>>, %arg5: memref<16x20xf32, #tpu.memory_space<vmem>>, %arg6: memref<128x32xf32, #tpu.memory_space<vmem>>, %arg7: memref<128x1xf32, #tpu.memory_space<vmem>>, %arg8: memref<64x128xf32, #tpu.memory_space<vmem>>, %arg9: memref<64x1xf32, #tpu.memory_space<vmem>>, %arg10: memref<64x1xf32, #tpu.memory_space<vmem>>, %arg11: memref<1xf32, #tpu.memory_space<smem>>, %arg12: memref<1x8xf32, #tpu.memory_space<vmem>>) attributes {dimension_semantics = [#tpu.dimension_semantics<parallel>], iteration_bounds = array<i64: 1>, scalar_prefetch = 0 : i64, scratch_operands = 0 : i64, tpu.core_type = #tpu.core_type<tc>, window_params = [{transform_indices = @transform_0, window_bounds = array<i64: 8, 32>}, {transform_indices = @transform_1, window_bounds = array<i64: 1, 8>}, {transform_indices = @transform_2, window_bounds = array<i64: 1, 8>}, {pipeline_mode = #tpu.pipeline_mode<synchronous>, transform_indices = @transform_3, window_bounds = array<i64: 16, 10>}, {pipeline_mode = #tpu.pipeline_mode<synchronous>, transform_indices = @transform_4, window_bounds = array<i64: 16, 20>}, {pipeline_mode = #tpu.pipeline_mode<synchronous>, transform_indices = @transform_5, window_bounds = array<i64: 128, 32>}, {pipeline_mode = #tpu.pipeline_mode<synchronous>, transform_indices = @transform_6, window_bounds = array<i64: 128, 1>}, {pipeline_mode = #tpu.pipeline_mode<synchronous>, transform_indices = @transform_7, window_bounds = array<i64: 64, 128>}, {pipeline_mode = #tpu.pipeline_mode<synchronous>, transform_indices = @transform_8, window_bounds = array<i64: 64, 1>}, {pipeline_mode = #tpu.pipeline_mode<synchronous>, transform_indices = @transform_9, window_bounds = array<i64: 64, 1>}, {transform_indices = @transform_10, window_bounds = array<i64: 1>}, {transform_indices = @transform_11, window_bounds = array<i64: 1, 8>}]} {
    %c0 = arith.constant 0 : index
    %c0_0 = arith.constant 0 : index
    %0 = vector.load %arg6[%c0, %c0_0] : memref<128x32xf32, #tpu.memory_space<vmem>>, vector<128x32xf32>
    %1 = arith.truncf %0 : vector<128x32xf32> to vector<128x32xbf16>
    %c0_1 = arith.constant 0 : index
    %c0_2 = arith.constant 0 : index
    %2 = vector.load %arg1[%c0_1, %c0_2] : memref<8x32xf32, #tpu.memory_space<vmem>>, vector<8x32xf32>
    %3 = arith.truncf %2 : vector<8x32xf32> to vector<8x32xbf16>
    %cst = arith.constant dense<0.000000e+00> : vector<128x8xf32>
    %4 = tpu.matmul %1, %3, %cst {dimension_numbers = #tpu.dot_dimension_numbers<[1], [1], [0], [0], [0, 0, 1, 0], [], []>} : vector<128x32xbf16>, vector<8x32xbf16>, vector<128x8xf32> -> vector<128x8xf32>
    %c0_3 = arith.constant 0 : index
    %c0_4 = arith.constant 0 : index
    %5 = vector.load %arg7[%c0_3, %c0_4] : memref<128x1xf32, #tpu.memory_space<vmem>>, vector<128x1xf32>
    %6 = vector.broadcast %5 : vector<128x1xf32> to vector<128x8xf32>
    %7 = arith.addf %4, %6 : vector<128x8xf32>
    %cst_5 = arith.constant 0.000000e+00 : f32
    %8 = vector.broadcast %cst_5 : f32 to vector<128x8xf32>
    %9 = arith.maximumf %7, %8 : vector<128x8xf32>
    %c0_6 = arith.constant 0 : index
    %c0_7 = arith.constant 0 : index
    %10 = vector.load %arg8[%c0_6, %c0_7] : memref<64x128xf32, #tpu.memory_space<vmem>>, vector<64x128xf32>
    %11 = arith.truncf %10 : vector<64x128xf32> to vector<64x128xbf16>
    %12 = arith.truncf %9 : vector<128x8xf32> to vector<128x8xbf16>
    %cst_8 = arith.constant dense<0.000000e+00> : vector<64x8xf32>
    %13 = tpu.matmul %11, %12, %cst_8 {dimension_numbers = #tpu.dot_dimension_numbers<[1], [0], [0], [1], [0, 0, 1, 1], [], []>} : vector<64x128xbf16>, vector<128x8xbf16>, vector<64x8xf32> -> vector<64x8xf32>
    %c0_9 = arith.constant 0 : index
    %c0_10 = arith.constant 0 : index
    %14 = vector.load %arg9[%c0_9, %c0_10] : memref<64x1xf32, #tpu.memory_space<vmem>>, vector<64x1xf32>
    %15 = vector.broadcast %14 : vector<64x1xf32> to vector<64x8xf32>
    %16 = arith.addf %13, %15 : vector<64x8xf32>
    %cst_11 = arith.constant 0.000000e+00 : f32
    %17 = vector.broadcast %cst_11 : f32 to vector<64x8xf32>
    %18 = arith.maximumf %16, %17 : vector<64x8xf32>
    %c0_12 = arith.constant 0 : index
    %c0_13 = arith.constant 0 : index
    %19 = vector.load %arg10[%c0_12, %c0_13] : memref<64x1xf32, #tpu.memory_space<vmem>>, vector<64x1xf32>
    %20 = vector.broadcast %19 : vector<64x1xf32> to vector<64x8xf32>
    %21 = arith.mulf %18, %20 : vector<64x8xf32>
    %cst_14 = arith.constant dense<0.000000e+00> : vector<8xf32>
    %22 = vector.multi_reduction <add>, %21, %cst_14 [0] : vector<64x8xf32> to vector<8xf32>
    %23 = vector.shape_cast %22 : vector<8xf32> to vector<1x8xf32>
    %24 = tpu.iota {dimensions = array<i32: 0>} : vector<10x8xi32>
    %c0_15 = arith.constant 0 : index
    %c0_16 = arith.constant 0 : index
    %25 = vector.load %arg2[%c0_15, %c0_16] : memref<1x8xi32, #tpu.memory_space<vmem>>, vector<1x8xi32>
    %26 = vector.broadcast %25 : vector<1x8xi32> to vector<10x8xi32>
    %27 = arith.cmpi eq, %24, %26 : vector<10x8xi32>
    %28 = arith.extui %27 : vector<10x8xi1> to vector<10x8xi32>
    %29 = arith.sitofp %28 : vector<10x8xi32> to vector<10x8xf32>
    %30 = tpu.iota {dimensions = array<i32: 0>} : vector<20x8xi32>
    %c0_17 = arith.constant 0 : index
    %c0_18 = arith.constant 0 : index
    %31 = vector.load %arg3[%c0_17, %c0_18] : memref<1x8xi32, #tpu.memory_space<vmem>>, vector<1x8xi32>
    %32 = vector.broadcast %31 : vector<1x8xi32> to vector<20x8xi32>
    %33 = arith.cmpi eq, %30, %32 : vector<20x8xi32>
    %34 = arith.extui %33 : vector<20x8xi1> to vector<20x8xi32>
    %35 = arith.sitofp %34 : vector<20x8xi32> to vector<20x8xf32>
    %c0_19 = arith.constant 0 : index
    %c0_20 = arith.constant 0 : index
    %36 = vector.load %arg4[%c0_19, %c0_20] : memref<16x10xf32, #tpu.memory_space<vmem>>, vector<16x10xf32>
    %cst_21 = arith.constant dense<0.000000e+00> : vector<16x8xf32>
    %37 = tpu.matmul %36, %29, %cst_21 {dimension_numbers = #tpu.dot_dimension_numbers<[1], [0], [0], [1], [0, 0, 1, 1], [], []>} : vector<16x10xf32>, vector<10x8xf32>, vector<16x8xf32> -> vector<16x8xf32>
    %c0_22 = arith.constant 0 : index
    %c0_23 = arith.constant 0 : index
    %38 = vector.load %arg5[%c0_22, %c0_23] : memref<16x20xf32, #tpu.memory_space<vmem>>, vector<16x20xf32>
    %cst_24 = arith.constant dense<0.000000e+00> : vector<16x8xf32>
    %39 = tpu.matmul %38, %35, %cst_24 {dimension_numbers = #tpu.dot_dimension_numbers<[1], [0], [0], [1], [0, 0, 1, 1], [], []>} : vector<16x20xf32>, vector<20x8xf32>, vector<16x8xf32> -> vector<16x8xf32>
    %40 = arith.mulf %37, %39 : vector<16x8xf32>
    %cst_25 = arith.constant dense<0.000000e+00> : vector<8xf32>
    %41 = vector.multi_reduction <add>, %40, %cst_25 [0] : vector<16x8xf32> to vector<8xf32>
    %42 = vector.shape_cast %41 : vector<8xf32> to vector<1x8xf32>
    %43 = arith.addf %23, %42 : vector<1x8xf32>
    %c0_26 = arith.constant 0 : index
    %44 = memref.load %arg11[%c0_26] : memref<1xf32, #tpu.memory_space<smem>>
    %45 = vector.broadcast %44 : f32 to vector<1x8xf32>
    %46 = arith.addf %43, %45 : vector<1x8xf32>
    %c0_27 = arith.constant 0 : index
    %c0_28 = arith.constant 0 : index
    %47 = vector.load %arg12[%c0_27, %c0_28] : memref<1x8xf32, #tpu.memory_space<vmem>>, vector<1x8xf32>
    tpu.vector_store %arg12[%c0_27, %c0_28], %46 {strides = array<i32>} : memref<1x8xf32, #tpu.memory_space<vmem>>, vector<1x8xf32>,
    return
  }
  func.func @transform_0(%arg0: i32) -> (i32, i32) {
    %c0_i32 = arith.constant 0 : i32
    %c0_i32_0 = arith.constant 0 : i32
    return %arg0, %c0_i32 : i32, i32
  }
  func.func @transform_1(%arg0: i32) -> (i32, i32) {
    %c0_i32 = arith.constant 0 : i32
    %c0_i32_0 = arith.constant 0 : i32
    return %c0_i32, %arg0 : i32, i32
  }
  func.func @transform_2(%arg0: i32) -> (i32, i32) {
    %c0_i32 = arith.constant 0 : i32
    %c0_i32_0 = arith.constant 0 : i32
    return %c0_i32, %arg0 : i32, i32
  }
  func.func @transform_3(%arg0: i32) -> (i32, i32) {
    %c0_i32 = arith.constant 0 : i32
    %c0_i32_0 = arith.constant 0 : i32
    %c0_i32_1 = arith.constant 0 : i32
    return %c0_i32, %c0_i32_0 : i32, i32
  }
  func.func @transform_4(%arg0: i32) -> (i32, i32) {
    %c0_i32 = arith.constant 0 : i32
    %c0_i32_0 = arith.constant 0 : i32
    %c0_i32_1 = arith.constant 0 : i32
    return %c0_i32, %c0_i32_0 : i32, i32
  }
  func.func @transform_5(%arg0: i32) -> (i32, i32) {
    %c0_i32 = arith.constant 0 : i32
    %c0_i32_0 = arith.constant 0 : i32
    %c0_i32_1 = arith.constant 0 : i32
    return %c0_i32, %c0_i32_0 : i32, i32
  }
  func.func @transform_6(%arg0: i32) -> (i32, i32) {
    %c0_i32 = arith.constant 0 : i32
    %c0_i32_0 = arith.constant 0 : i32
    %c0_i32_1 = arith.constant 0 : i32
    return %c0_i32, %c0_i32_0 : i32, i32
  }
  func.func @transform_7(%arg0: i32) -> (i32, i32) {
    %c0_i32 = arith.constant 0 : i32
    %c0_i32_0 = arith.constant 0 : i32
    %c0_i32_1 = arith.constant 0 : i32
    return %c0_i32, %c0_i32_0 : i32, i32
  }
  func.func @transform_8(%arg0: i32) -> (i32, i32) {
    %c0_i32 = arith.constant 0 : i32
    %c0_i32_0 = arith.constant 0 : i32
    %c0_i32_1 = arith.constant 0 : i32
    return %c0_i32, %c0_i32_0 : i32, i32
  }
  func.func @transform_9(%arg0: i32) -> (i32, i32) {
    %c0_i32 = arith.constant 0 : i32
    %c0_i32_0 = arith.constant 0 : i32
    %c0_i32_1 = arith.constant 0 : i32
    return %c0_i32, %c0_i32_0 : i32, i32
  }
  func.func @transform_10(%arg0: i32) -> i32 {
    %c0_i32 = arith.constant 0 : i32
    %c0_i32_0 = arith.constant 0 : i32
    return %c0_i32 : i32
  }
  func.func @transform_11(%arg0: i32) -> (i32, i32) {
    %c0_i32 = arith.constant 0 : i32
    %c0_i32_0 = arith.constant 0 : i32
    return %c0_i32, %arg0 : i32, i32
  }
}

</mosaic_0001>

<bundles_post_ra>
// kernel: tpu_custom_call.1
= control target key start
LH: loop header
LB: loop body
LE: loop exit
PB: predicated region body
PF: predicated region fallthrough
CT: control target
= control target key end

     0   :  { %vm163_vm0 = vcmask 261120   ;;  %v633_v3 = vmov 0   ;;  %s917_s0 = inlined_call_operand.vmem [shape: f32[8,32], index: 0, kind: input, shape index: {}]   ;;  %s918_s1 = inlined_call_operand.vmem [shape: s32[1,8], index: 1, kind: input, shape index: {}]   ;;  %s919_s2 = inlined_call_operand.vmem [shape: s32[1,8], index: 2, kind: input, shape index: {}]   ;;  %s920_s3 = inlined_call_operand.vmem [shape: f32[16,10], index: 3, kind: input, shape index: {}]   ;;  %s921_s4 = inlined_call_operand.vmem [shape: f32[16,20], index: 4, kind: input, shape index: {}]   ;;  %s922_s5 = inlined_call_operand.vmem [shape: f32[128,32], index: 5, kind: input, shape index: {}]   ;;  %s923_s6 = inlined_call_operand.vmem [shape: f32[128,1], index: 6, kind: input, shape index: {}]   ;;  %s924_s7 = inlined_call_operand.vmem [shape: f32[64,128], index: 7, kind: input, shape index: {}]   ;;  %s925_s8 = inlined_call_operand.vmem [shape: f32[64,1], index: 8, kind: input, shape index: {}]   ;;  %s926_s9 = inlined_call_operand.vmem [shape: f32[64,1], index: 9, kind: input, shape index: {}]   ;;  %s927_s10 = inlined_call_operand.<no memory space> [shape: f32[1], index: 10, kind: input, shape index: {}]   ;;  %s928_s11 = inlined_call_operand.hbm [shape: f32[1,8], index: 11, kind: output, shape index: {}]  }
   0x1   :  { %v81_v0 = vld [vmem:[%s923_s6 + $0x70] sm:$0xff]  ;;  %v79_v1 = vld [vmem:[%s923_s6 + $0x60] sm:$0xff]  ;;  %603 = vset.pattern.permute.xlu1 %v633_v3  ;;  %602 = vset.pattern.permute.xlu0 %v633_v3  ;;  %v42_v7 = vld [vmem:[%s922_s5 + $0x8] sm:$0xff] }
   0x2   :  { %v65_v2 = vld [vmem:[%s917_s0] sm:$0xff]  ;;  %155 = vperm.xlu0 %602, %v81_v0   ;;  %145 = vperm.xlu1 %603, %v79_v1   ;;  %v50_v9 = vld [vmem:[%s922_s5 + $0x48] sm:$0xff]  ;;  %v77_v10 = vld [vmem:[%s923_s6 + $0x50] sm:$0xff] }
   0x3   :  { %v66_v4 = vpack.c.bf16 %v65_v2, %v65_v2  ;;  %v41_v6 = vld [vmem:[%s922_s5] sm:$0xff]  ;;  %604 = vset.pattern.permute.xlu2 %v633_v3  ;;  %v82_v11 = vld [vmem:[%s923_s6 + $0x78] sm:$0xff]  ;;  %v80_v12 = vld [vmem:[%s923_s6 + $0x68] sm:$0xff] }
   0x4   :  { %v49_v8 = vld [vmem:[%s922_s5 + $0x40] sm:$0xff]  ;;  %135 = vperm.xlu2 %604, %v77_v10   ;;  %v57_v13 = vpack.c.bf16 %v42_v7, %v41_v6 }
   0x5   :  { %v189_v5 = vsel %vm163_vm0, %v66_v4, 0  ;;  %v61_v14 = vpack.c.bf16 %v50_v9, %v49_v8 }
   0x6   :  { %198 = vmatpush.bf16.xpose.msra.mxu0 %v189_v5  ;;  %589 = vmatpush.bf16.xpose.msra.mxu2 %v189_v5 }
   0x7   :  { %17 = vsyncpa [#allocation4], 0  ;;  %v78_v15 = vld [vmem:[%s923_s6 + $0x58] sm:$0xff]  ;;  %v76_v16 = vld [vmem:[%s923_s6 + $0x48] sm:$0xff]  ;;  %vm471_vm2 = vcmask 1041408   ;;  %vm507_vm5 = vcmask 1043456  }
   0x8   :  { %v75_v17 = vld [vmem:[%s923_s6 + $0x40] sm:$0xff]  ;;  %v43_v18 = vld [vmem:[%s922_s5 + $0x10] sm:$0xff]  ;;  %v44_v20 = vld [vmem:[%s922_s5 + $0x18] sm:$0xff]  ;;  %vm464_vm8 = vcmask 80896   ;;  %vm500_vm9 = vcmask 162816   ;;  %vm417_vm10 = vcmask 64512  }
   0x9   :  { %v73_v19 = vld [vmem:[%s923_s6 + $0x30] sm:$0xff]  ;;  %v52_v22 = vld [vmem:[%s922_s5 + $0x58] sm:$0xff]  ;;  %v71_v24 = vld [vmem:[%s923_s6 + $0x20] sm:$0xff]  ;;  %v58_v25 = vpack.c.bf16 %v44_v20, %v43_v18  ;;  %s558_s15 = sshll.u32 %s928_s11, 4  ;;  %vm549_vm11 = vcmask 57344   ;;  %s559_s15 = int_to_ptr.hbm [resolvable:$true] %s558_s15 }
   0xa   :  { %160 = vperm.xlu0 %602, %v82_v11   ;;  %150 = vperm.xlu1 %603, %v80_v12   ;;  %v51_v21 = vld [vmem:[%s922_s5 + $0x50] sm:$0xff]  ;;  %v74_v23 = vld [vmem:[%s923_s6 + $0x38] sm:$0xff]  ;;  %v72_v27 = vld [vmem:[%s923_s6 + $0x28] sm:$0xff] }
   0xb   :  { %v62_v26 = vpack.c.bf16 %v52_v22, %v51_v21  ;;  %v70_v28 = vld [vmem:[%s923_s6 + $0x18] sm:$0xff]  ;;  %v69_v29 = vld [vmem:[%s923_s6 + $0x10] sm:$0xff]  ;;  %v45_v30 = vld [vmem:[%s922_s5 + $0x20] sm:$0xff] }
   0xc   :  { %140 = vperm.xlu2 %604, %v78_v15   ;;  %v67_v31 = vld [vmem:[%s923_s6] sm:$0xff]  ;;  %v46_v32 = vld [vmem:[%s922_s5 + $0x28] sm:$0xff]  ;;  %v279_v40 = vld [vmem:[%s925_s8 + $0x18] sm:$0xff] }
   0xd   :  { %567 = vmatmul.msk.bf16.vlgmr.msra.gmra.mxu0 %vm163_vm0, %v57_v13  ;;  %571 = vmatmul.msk.bf16.vlgmr.msra.gmra.mxu2 %vm163_vm0, %v61_v14  ;;  %v53_v33 = vld [vmem:[%s922_s5 + $0x60] sm:$0xff]  ;;  %v54_v34 = vld [vmem:[%s922_s5 + $0x68] sm:$0xff]  ;;  %v59_v37 = vpack.c.bf16 %v46_v32, %v45_v30  ;;  %v278_v41 = vld [vmem:[%s925_s8 + $0x10] sm:$0xff] }
   0xe   :  { %v276_v35 = vld [vmem:[%s925_s8] sm:$0xff]  ;;  %v68_v36 = vld [vmem:[%s923_s6 + $0x8] sm:$0xff]  ;;  %v63_v38 = vpack.c.bf16 %v54_v34, %v53_v33  ;;  %v47_v42 = vld [vmem:[%s922_s5 + $0x30] sm:$0xff] }
   0xf   :  { %v277_v39 = vld [vmem:[%s925_s8 + $0x8] sm:$0xff]  ;;  %v361_v43 = vld [vmem:[%s926_s9] sm:$0xff]  ;;  %v48_v44 = vld [vmem:[%s922_s5 + $0x38] sm:$0xff] }
  0x10   :  { %v55_v45 = vld [vmem:[%s922_s5 + $0x70] sm:$0xff]  ;;  %v56_v46 = vld [vmem:[%s922_s5 + $0x78] sm:$0xff]  ;;  %v280_v47 = vld [vmem:[%s925_s8 + $0x20] sm:$0xff]  ;;  %v60_v49 = vpack.c.bf16 %v48_v44, %v47_v42 }
  0x11   :  { %v362_v48 = vld [vmem:[%s926_s9 + $0x8] sm:$0xff]  ;;  %v64_v50 = vpack.c.bf16 %v56_v46, %v55_v45  ;;  %v363_v51 = vld [vmem:[%s926_s9 + $0x10] sm:$0xff]  ;;  %v364_v52 = vld [vmem:[%s926_s9 + $0x18] sm:$0xff] }
  0x12   :  { %130 = vperm.xlu1 %603, %v76_v16   ;;  %125 = vperm.xlu0 %602, %v75_v17   ;;  %v281_v53 = vld [vmem:[%s925_s8 + $0x28] sm:$0xff]  ;;  %v282_v54 = vld [vmem:[%s925_s8 + $0x30] sm:$0xff]  ;;  %v283_v55 = vld [vmem:[%s925_s8 + $0x38] sm:$0xff] }
  0x13   :  { %v365_v56 = vld [vmem:[%s926_s9 + $0x20] sm:$0xff]  ;;  %v366_v57 = vld [vmem:[%s926_s9 + $0x28] sm:$0xff]  ;;  %v368_v58 = vld [vmem:[%s926_s9 + $0x38] sm:$0xff] }
  0x14   :  { %115 = vperm.xlu2 %604, %v73_v19   ;;  %v367_v59 = vld [vmem:[%s926_s9 + $0x30] sm:$0xff] }
  0x1a   :  { %120 = vperm.xlu0 %602, %v74_v23   ;;  %105 = vperm.xlu1 %603, %v71_v24  }
  0x1c   :  { %110 = vperm.xlu2 %604, %v72_v27  }
  0x1d   :  { %568 = vmatmul.msk.bf16.gmra.mxu0 %vm163_vm0, %v58_v25  ;;  %572 = vmatmul.msk.bf16.gmra.mxu2 %vm163_vm0, %v62_v26 }
  0x22   :  { %100 = vperm.xlu1 %603, %v70_v28   ;;  %95 = vperm.xlu0 %602, %v69_v29  }
  0x24   :  { %85 = vperm.xlu2 %604, %v67_v31  }
  0x2a   :  { %286 = vperm.xlu1 %603, %v276_v35   ;;  %90 = vperm.xlu0 %602, %v68_v36  }
  0x2c   :  { %291 = vperm.xlu2 %604, %v277_v39  }
  0x2d   :  { %569 = vmatmul.msk.bf16.gmra.mxu0 %vm163_vm0, %v59_v37  ;;  %573 = vmatmul.msk.bf16.gmra.mxu2 %vm163_vm0, %v63_v38 }
  0x32   :  { %301 = vperm.xlu1 %603, %v279_v40   ;;  %296 = vperm.xlu0 %602, %v278_v41  }
  0x34   :  { %371 = vperm.xlu2 %604, %v361_v43  }
  0x3a   :  { %306 = vperm.xlu1 %603, %v280_v47   ;;  %376 = vperm.xlu0 %602, %v362_v48  }
  0x3c   :  { %381 = vperm.xlu2 %604, %v363_v51   ;;  %v439_v51 = vlaneseq }
  0x3d   :  { %570 = vmatmul.msk.bf16.gmra.mxu0 %vm163_vm0, %v60_v49  ;;  %574 = vmatmul.msk.bf16.gmra.mxu2 %vm163_vm0, %v64_v50 }
  0x42   :  { %386 = vperm.xlu1 %603, %v364_v52   ;;  %311 = vperm.xlu0 %602, %v281_v53  }
  0x44   :  { %316 = vperm.xlu2 %604, %v282_v54  }
  0x4a   :  { %321 = vperm.xlu1 %603, %v283_v55   ;;  %391 = vperm.xlu0 %602, %v365_v56  }
  0x4c   :  { %396 = vperm.xlu2 %604, %v366_v57  }
  0x52   :  { %406 = vperm.xlu1 %603, %v368_v58   ;;  %401 = vperm.xlu0 %602, %v367_v59   ;;  %v440_v58 = vshrl.u32 %v439_v51, 7 }
  0x5e   :  { %v136_v8 = vpop.permute.xlu2 %135 }
  0x66   :  { %v141_v14 = vpop.permute.xlu2 %140 }
  0x6e   :  { %v116_v22 = vpop.permute.xlu2 %115 }
  0x74   :  { %v156_v4 = vpop.permute.xlu0 %155  ;;  %v146_v6 = vpop.permute.xlu1 %145 }
  0x76   :  { %v111_v40 = vpop.permute.xlu2 %110 }
  0x7c   :  { %v161_v9 = vpop.permute.xlu0 %160  ;;  %v151_v11 = vpop.permute.xlu1 %150 }
  0x7e   :  { %v86_v59 = vpop.permute.xlu2 %85 }
  0x84   :  { %v126_v15 = vpop.permute.xlu0 %125  ;;  %v131_v16 = vpop.permute.xlu1 %130 }
  0x8a   :  { %v853_v60 = vpop.f32.mrf.mxu0 }
  0x8c   :  { %v121_v26 = vpop.permute.xlu0 %120  ;;  %v106_v35 = vpop.permute.xlu1 %105 }
  0x90   :  { %v220_v61 = vpop.f32.mrf.mxu2 }
  0x91   :  { %v221_v36 = vadd.f32 %v220_v61, %v126_v15  ;;  %v201_v61 = vadd.f32 %v853_v60, %v86_v59  ;;  %v256_v60 = vld [vmem:[%s924_s7] sm:$0xff] }
  0x92   :  { %v855_v62 = vpop.f32.mrf.mxu0 }
  0x93   :  { %v248_v44 = vmax.f32 %v221_v36, 0.0 }
  0x94   :  { %v96_v45 = vpop.permute.xlu0 %95  ;;  %v101_v52 = vpop.permute.xlu1 %100 }
  0x98   :  { %v222_v63 = vpop.f32.mrf.mxu2 }
  0x99   :  { %v223_v32 = vadd.f32 %v222_v63, %v131_v16 }
  0x9a   :  { %v205_v0 = vpop.f32.mrf.mxu0 }
  0x9b   :  { %v249_v39 = vmax.f32 %v223_v32, 0.0  ;;  %v206_v53 = vadd.f32 %v205_v0, %v96_v45  ;;  %v605_v0 = vld [vmem:[%s918_s1] ss:$0 sm:$0xff]  ;;  %v292_v32 = vpop.permute.xlu2 %291 }
  0x9c   :  { %v91_v63 = vpop.permute.xlu0 %90  ;;  %vm444_vm4 = vcmp.eq.s32.totalorder %v440_v58, %v605_v0 }
  0x9d   :  { %v272_v46 = vpack.c.bf16 %v249_v39, %v248_v44 }
  0xa0   :  { %v225_v1 = vpop.f32.mrf.mxu2 }
  0xa1   :  { %v226_v30 = vadd.f32 %v225_v1, %v136_v8  ;;  %v242_v1 = vmax.f32 %v206_v53, 0.0 }
  0xa2   :  { %v207_v3 = vpop.f32.mrf.mxu0 }
  0xa3   :  { %v250_v38 = vmax.f32 %v226_v30, 0.0  ;;  %v208_v54 = vadd.f32 %v207_v3, %v101_v52  ;;  %v240_v3 = vmax.f32 %v201_v61, 0.0  ;;  %v287_v30 = vpop.permute.xlu1 %286 }
  0xa8   :  { %v227_v2 = vpop.f32.mrf.mxu2 }
  0xa9   :  { %v228_v27 = vadd.f32 %v227_v2, %v141_v14  ;;  %v203_v2 = vadd.f32 %v855_v62, %v91_v63  ;;  %v606_v62 = vld [vmem:[%s919_s2] ss:$0 sm:$0xff]  ;;  %v634_v14 = vmov 0.0  }
  0xaa   :  { %v210_v7 = vpop.f32.mrf.mxu0  ;;  %vm453_vm7 = vcmp.eq.s32.totalorder %v440_v58, %v606_v62 }
  0xab   :  { %v251_v33 = vmax.f32 %v228_v27, 0.0  ;;  %v211_v47 = vadd.f32 %v210_v7, %v106_v35  ;;  %v241_v7 = vmax.f32 %v203_v2, 0.0 }
  0xad   :  { %v273_v43 = vpack.c.bf16 %v251_v33, %v250_v38  ;;  %v244_v55 = vmax.f32 %v211_v47, 0.0  ;;  %v297_v33 = vpop.permute.xlu0 %296 }
  0xb0   :  { %v230_v5 = vpop.f32.mrf.mxu2 }
  0xb1   :  { %v231_v23 = vadd.f32 %v230_v5, %v146_v6  ;;  %v441_v6 = vadd.s32 8, %v440_v58 }
  0xb2   :  { %v212_v12 = vpop.f32.mrf.mxu0 }
  0xb3   :  { %v252_v31 = vmax.f32 %v231_v23, 0.0  ;;  %v213_v48 = vadd.f32 %v212_v12, %v111_v40  ;;  %vm445_vm1 = vcmp.eq.s32.totalorder %v441_v6, %v605_v0  ;;  %v263_v12 = vld [vmem:[%s924_s7 + $0x38] sm:$0xff]  ;;  %vm454_vm6 = vcmp.eq.s32.totalorder %v441_v6, %v606_v62  ;;  %v462_v23 = vld [vmem:[%s920_s3] sm:$0xff] }
  0xb4   :  { %v576_v15 = vsel %vm445_vm1, 1.0, %v634_v14 }
  0xb5   :  { %v245_v56 = vmax.f32 %v213_v48, 0.0  ;;  %v377_v38 = vpop.permute.xlu0 %376 }
  0xb7   :  { %v270_v5 = vpack.c.bf16 %v245_v56, %v244_v55 }
  0xb8   :  { %v232_v10 = vpop.f32.mrf.mxu2 }
  0xb9   :  { %v233_v20 = vadd.f32 %v232_v10, %v151_v11  ;;  %v257_v10 = vld [vmem:[%s924_s7 + $0x8] sm:$0xff]  ;;  %v262_v11 = vld [vmem:[%s924_s7 + $0x30] sm:$0xff] }
  0xba   :  { %v215_v18 = vpop.f32.mrf.mxu0  ;;  %v264_v16 = vpack.c.bf16 %v257_v10, %v256_v60 }
  0xbb   :  { %v253_v28 = vmax.f32 %v233_v20, 0.0  ;;  %v216_v41 = vadd.f32 %v215_v18, %v116_v22  ;;  %v258_v20 = vld [vmem:[%s924_s7 + $0x10] sm:$0xff] }
  0xbd   :  { %v274_v34 = vpack.c.bf16 %v253_v28, %v252_v31  ;;  %v246_v49 = vmax.f32 %v216_v41, 0.0  ;;  %v498_v28 = vld [vmem:[%s921_s4] sm:$0xff]  ;;  %v312_v44 = vpop.permute.xlu0 %311 }
  0xc0   :  { %v235_v13 = vpop.f32.mrf.mxu2 }
  0xc1   :  { %v236_v17 = vadd.f32 %v235_v13, %v156_v4  ;;  %v243_v4 = vmax.f32 %v208_v54, 0.0  ;;  %v268_v13 = vpack.c.bf16 %v241_v7, %v240_v3 }
  0xc2   :  { %v217_v37 = vpop.f32.mrf.mxu0 }
  0xc3   :  { %v254_v24 = vmax.f32 %v236_v17, 0.0  ;;  %v218_v42 = vadd.f32 %v217_v37, %v121_v26  ;;  %v269_v8 = vpack.c.bf16 %v243_v4, %v242_v1  ;;  %v267_v17 = vpack.c.bf16 %v263_v12, %v262_v11  ;;  %v261_v26 = vld [vmem:[%s924_s7 + $0x28] sm:$0xff]  ;;  %v372_v37 = vpop.permute.xlu2 %371 }
  0xc5   :  { %v247_v50 = vmax.f32 %v218_v42, 0.0  ;;  %v392_v61 = vpop.permute.xlu0 %391 }
  0xc7   :  { %v271_v57 = vpack.c.bf16 %v247_v50, %v246_v49 }
  0xc8   :  { %v237_v19 = vpop.f32.mrf.mxu2 }
  0xc9   :  { %v238_v21 = vadd.f32 %v237_v19, %v161_v9  ;;  %v450_v9 = vadd.s32 16, %v440_v58  ;;  %v635_v19 = vmov 1.0  }
  0xcb   :  { %v255_v25 = vmax.f32 %v238_v21, 0.0  ;;  %vm455_vm3 = vcmp.eq.s32.totalorder %v450_v9, %v606_v62  ;;  %v259_v21 = vld [vmem:[%s924_s7 + $0x18] sm:$0xff] }
  0xcc   :  { %v579_v18 = vsel %vm455_vm3, 1.0, %v634_v14  ;;  %v265_v22 = vpack.c.bf16 %v259_v21, %v258_v20 }
  0xcd   :  { %v275_v29 = vpack.c.bf16 %v255_v25, %v254_v24  ;;  %v463_v24 = vld [vmem:[%s920_s3 + $0x8] sm:$0xff]  ;;  %v260_v25 = vld [vmem:[%s924_s7 + $0x20] sm:$0xff]  ;;  %s636_s7 = smov [#allocation3]  }
  0xce   :  { %v266_v27 = vpack.c.bf16 %v261_v26, %v260_v25  ;;  %s556_s12 = sshll.u32 %s636_s7, 4  ;;  %s557_s12 = int_to_ptr.vmem [resolvable:$true] %s556_s12 }
  0xcf   :  { %324 = vmatpush.bf16.msra.mxu1 %v275_v29  ;;  %590 = vmatpush.bf16.msra.mxu3 %v275_v29  ;;  %v499_v29 = vld [vmem:[%s921_s4 + $0x8] sm:$0xff] }
  0xd3   :  { %325 = vmatpush.bf16.msra.mxu1 %v274_v34  ;;  %591 = vmatpush.bf16.msra.mxu3 %v274_v34  ;;  %v302_v34 = vpop.permute.xlu1 %301 }
  0xd7   :  { %326 = vmatpush.bf16.msra.mxu1 %v273_v43  ;;  %592 = vmatpush.bf16.msra.mxu3 %v273_v43  ;;  %v382_v43 = vpop.permute.xlu2 %381 }
  0xdb   :  { %327 = vmatpush.bf16.msra.mxu1 %v272_v46  ;;  %593 = vmatpush.bf16.msra.mxu3 %v272_v46  ;;  %v307_v40 = vpop.permute.xlu1 %306 }
  0xdf   :  { %328 = vmatpush.bf16.msra.mxu1 %v271_v57  ;;  %594 = vmatpush.bf16.msra.mxu3 %v271_v57  ;;  %v317_v59 = vpop.permute.xlu2 %316 }
  0xe3   :  { %329 = vmatpush.bf16.msra.mxu1 %v270_v5  ;;  %595 = vmatpush.bf16.msra.mxu3 %v270_v5  ;;  %v387_v47 = vpop.permute.xlu1 %386 }
  0xe7   :  { %330 = vmatpush.bf16.msra.mxu1 %v269_v8  ;;  %596 = vmatpush.bf16.msra.mxu3 %v269_v8 }
  0xeb   :  { %331 = vmatpush.bf16.msra.mxu1 %v268_v13  ;;  %597 = vmatpush.bf16.msra.mxu3 %v268_v13  ;;  %v322_v4 = vpop.permute.xlu1 %321 }
  0xee   :  { %332 = vmatmul.bf16.vlgmr.msra.gmra.mxu1 %v264_v16  ;;  %347 = vmatmul.bf16.vlgmr.msra.gmra.mxu3 %v267_v17 }
  0xef   :  { %580 = vmatpush.msk.msrb.mxu3 %vm471_vm2, %v576_v15 }
  0xf1   :  { %581 = vmatpush.msk.msrb.mxu3 %vm444_vm4, %v635_v19 }
  0xf3   :  { %584 = vmatpush.msk.msra.mxu3 %vm507_vm5, %v579_v18  ;;  %v397_v18 = vpop.permute.xlu2 %396 }
  0xf5   :  { %585 = vmatpush.msk.msra.mxu3 %vm454_vm6, %v635_v19 }
  0xf7   :  { %586 = vmatpush.msk.msra.mxu3 %vm453_vm7, %v635_v19  ;;  %v402_v19 = vpop.permute.xlu0 %401 }
  0xfe   :  { %337 = vmatmul.bf16.gmra.mxu1 %v265_v22  ;;  %582 = vmatmul.msk.f32.vlgmr.msrb.gmra.mxu3 %vm464_vm8, %v462_v23 }
 0x106   :  { %583 = vmatmul.msk.f32.gmra.mxu3 %vm464_vm8, %v463_v24  ;;  %v407_v24 = vpop.permute.xlu1 %406 }
 0x10e   :  { %342 = vmatmul.bf16.gmra.mxu1 %v266_v27  ;;  %587 = vmatmul.msk.f32.vlgmr.msra.gmra.mxu3 %vm500_vm9, %v498_v28 }
 0x116   :  { %588 = vmatmul.msk.f32.gmra.mxu3 %vm500_vm9, %v499_v29 }
 0x16b   :  { %v333_v31 = vpop.f32.mrf.mxu1 }
 0x16c   :  { %v334_v48 = vadd.f32 %v333_v31, %v287_v30 }
 0x16e   :  { %v353_v53 = vmax.f32 %v334_v48, 0.0 }
 0x170   :  { %v409_v63 = vmul.f32 %v372_v37, %v353_v53 }
 0x171   :  { %v348_v35 = vpop.f32.mrf.mxu3 }
 0x172   :  { %v349_v5 = vadd.f32 %v348_v35, %v317_v59  ;;  %v418_v7 = vsel %vm417_vm10, %v409_v63, 0.0 }
 0x173   :  { %v335_v36 = vpop.f32.mrf.mxu1 }
 0x174   :  { %v336_v46 = vadd.f32 %v335_v36, %v292_v32  ;;  %v359_v11 = vmax.f32 %v349_v5, 0.0 }
 0x176   :  { %v354_v50 = vmax.f32 %v336_v46, 0.0  ;;  %v415_v21 = vmul.f32 %v402_v19, %v359_v11 }
 0x178   :  { %v410_v56 = vmul.f32 %v377_v38, %v354_v50  ;;  %v429_v31 = vsel %vm417_vm10, %v415_v21, 0.0  ;;  %v547_v50 = vstv %s927_s10 }
 0x179   :  { %v350_v39 = vpop.f32.mrf.mxu3 }
 0x17a   :  { %v419_v6 = vsel %vm417_vm10, %v410_v56, 0.0  ;;  %v351_v8 = vadd.f32 %v350_v39, %v322_v4 }
 0x17b   :  { %v338_v41 = vpop.f32.mrf.mxu1  ;;  %v420_v62 = vadd.f32 %v419_v6, %v418_v7 }
 0x17c   :  { %v339_v49 = vadd.f32 %v338_v41, %v297_v33  ;;  %v360_v15 = vmax.f32 %v351_v8, 0.0 }
 0x17e   :  { %v355_v54 = vmax.f32 %v339_v49, 0.0  ;;  %v416_v27 = vmul.f32 %v407_v24, %v360_v15 }
 0x180   :  { %v411_v1 = vmul.f32 %v382_v43, %v355_v54  ;;  %v431_v36 = vsel %vm417_vm10, %v416_v27, 0.0 }
 0x181   :  { %v492_v42 = vpop.f32.mrf.mxu3 }
 0x182   :  { %v421_v60 = vsel %vm417_vm10, %v411_v1, 0.0 }
 0x183   :  { %v340_v45 = vpop.f32.mrf.mxu1  ;;  %v422_v14 = vadd.f32 %v421_v60, %v420_v62 }
 0x184   :  { %v341_v51 = vadd.f32 %v340_v45, %v302_v34 }
 0x186   :  { %v356_v57 = vmax.f32 %v341_v51, 0.0 }
 0x188   :  { %v412_v0 = vmul.f32 %v387_v47, %v356_v57 }
 0x189   :  { %v495_v52 = vpop.f32.mrf.mxu3 }
 0x18a   :  { %v423_v12 = vsel %vm417_vm10, %v412_v0, 0.0 }
 0x18b   :  { %v343_v55 = vpop.f32.mrf.mxu1  ;;  %v424_v20 = vadd.f32 %v423_v12, %v422_v14 }
 0x18c   :  { %v344_v58 = vadd.f32 %v343_v55, %v307_v40 }
 0x18e   :  { %v357_v2 = vmax.f32 %v344_v58, 0.0 }
 0x190   :  { %v413_v9 = vmul.f32 %v392_v61, %v357_v2 }
 0x191   :  { %v528_v3 = vpop.f32.mrf.mxu3 }
 0x192   :  { %v425_v16 = vsel %vm417_vm10, %v413_v9, 0.0  ;;  %v534_v22 = vmul.f32 %v528_v3, %v492_v42 }
 0x193   :  { %v345_v10 = vpop.f32.mrf.mxu1  ;;  %v426_v25 = vadd.f32 %v425_v16, %v424_v20 }
 0x194   :  { %v346_v13 = vadd.f32 %v345_v10, %v312_v44  ;;  %v536_v32 = vsel %vm417_vm10, %v534_v22, 0.0 }
 0x196   :  { %v358_v17 = vmax.f32 %v346_v13, 0.0 }
 0x198   :  { %v414_v23 = vmul.f32 %v397_v18, %v358_v17 }
 0x199   :  { %v531_v26 = vpop.f32.mrf.mxu3 }
 0x19a   :  { %v427_v28 = vsel %vm417_vm10, %v414_v23, 0.0  ;;  %v535_v29 = vmul.f32 %v531_v26, %v495_v52 }
 0x19b   :  { %v428_v30 = vadd.f32 %v427_v28, %v426_v25 }
 0x19c   :  { %v537_v33 = vsel %vm417_vm10, %v535_v29, 0.0 }
 0x19d   :  { %v430_v34 = vadd.f32 %v429_v31, %v428_v30  ;;  %v538_v35 = vadd.f32 %v537_v33, %v536_v32 }
 0x19f   :  { %v432_v37 = vadd.f32 %v431_v36, %v430_v34  ;;  %v539_v38 = vrot.slane %v538_v35, 4 }
 0x1a1   :  { %v433_v39 = vrot.slane %v432_v37, 4  ;;  %v540_v40 = vadd.f32 %v539_v38, %v538_v35 }
 0x1a3   :  { %v434_v41 = vadd.f32 %v433_v39, %v432_v37  ;;  %v541_v42 = vrot.slane %v540_v40, 2 }
 0x1a5   :  { %v542_v43 = vadd.f32 %v541_v42, %v540_v40  ;;  %v435_v44 = vrot.slane %v434_v41, 2 }
 0x1a7   :  { %v543_v45 = vrot.slane %v542_v43, 1  ;;  %v436_v46 = vadd.f32 %v435_v44, %v434_v41 }
 0x1a9   :  { %v437_v47 = vrot.slane %v436_v46, 1  ;;  %v544_v49 = vadd.f32 %v543_v45, %v542_v43 }
 0x1ab   :  { %v438_v48 = vadd.f32 %v437_v47, %v436_v46 }
 0x1ad   :  { %v545_v51 = vadd.f32 %v544_v49, %v438_v48 }
 0x1af   :  { %v548_v52 = vadd.f32 %v547_v50, %v545_v51 }
 0x1b1   :  { %550 = vst.msk [vmem:[#allocation3] sm:$0x1] %vm549_vm11, %v548_v52 }
 0x1b2   :  { %561 = dma.vmem_to_hbm [thread:$0]  %s557_s12, 16, %s559_s15, [#allocation4]  }
 0x1b3   :  { %631 = dma.done.wait [#allocation4], 16  }
 0x1b4   :  { %632 = vsyncadd [#allocation4], 4294967280 }
 0x1b5   :  { %566 = vsyncpa [#allocation4], 1 }

</bundles_post_ra>
